<compile_context>
chip_gen: v5e
topology: v5e:2x2
jax: 0.10.0
libtpu: 0.0.40
codegen_flags: <defaults>
</compile_context>

<pallas_src>
import functools

import jax
import jax.numpy as jnp
from jax import lax
from jax.experimental import pallas as pl
from jax.experimental.pallas import tpu as pltpu

BN_EPS = 1e-5
LEAKY_SLOPE = 0.01  # PyTorch nn.LeakyReLU default negative_slope


def _round_up(x, m):
    return (x + m - 1) // m * m


def _vmem_limit_bytes():
    """Generation-aware VMEM cap (~3/4 of physical), safe fallback if unavailable."""
    try:
        cap = getattr(pltpu.get_tpu_info(), "vmem_capacity_bytes", None)
        if cap:
            return int(cap) * 3 // 4
    except Exception:
        pass
    return 48 << 20  # conservative: fits v7x's 64 MiB physical VMEM


@functools.partial(jax.jit, static_argnames=("stride",))
def conv_bn_leaky(x_nchw, weight_oihw, gamma, beta, stride=1):
    """Forward pass of yolov4.Conv. x_nchw: (N, Cin, H, W) float32."""
    N, Cin, H, W = x_nchw.shape
    Cout, Cin_w, kh, kw = weight_oihw.shape
    assert Cin == Cin_w and kh == kw, (x_nchw.shape, weight_oihw.shape)
    k = kh
    pad = k // 2
    Ho = (H + 2 * pad - k) // stride + 1
    Wo = (W + 2 * pad - k) // stride + 1
    Hp, Wp = H + 2 * pad, W + 2 * pad

    Cout_pad = _round_up(Cout, 128)      # lane-dense stores / full MXU lanes
    K = k * k * Cin
    M = N * Ho * Wo
    inv_m = 1.0 / float(M)               # true element count per channel
    vmem_cap = _vmem_limit_bytes()

    # --- glue: NCHW -> padded NHWC bf16 (no im2col materialization) ---
    x_nhwc = jnp.transpose(x_nchw, (0, 2, 3, 1)).astype(jnp.bfloat16)
    x_padded = jnp.pad(x_nhwc, ((0, 0), (pad, pad), (pad, pad), (0, 0)))

    # weight OIHW -> (kh, kw, Cin, Cout) -> (K, Cout_pad), matching tap order.
    w_mat = jnp.transpose(weight_oihw, (2, 3, 1, 0)).reshape(K, Cout)
    w_mat = jnp.pad(w_mat, ((0, 0), (0, Cout_pad - Cout))).astype(jnp.bfloat16)

    gamma_p = jnp.pad(gamma.astype(jnp.float32).reshape(1, Cout),
                      ((0, 0), (0, Cout_pad - Cout)))
    beta_p = jnp.pad(beta.astype(jnp.float32).reshape(1, Cout),
                     ((0, 0), (0, Cout_pad - Cout)))

    # ------------- Pass 1: tap-indexed conv matmul + BN batch statistics -------------
    def pass1_kernel(*refs):
        x_refs = refs[:k]                                    # k padded input rows
        w_ref, gamma_ref, beta_ref = refs[k:k + 3]
        y_ref, scale_ref, shift_ref = refs[k + 3:k + 6]
        sum_sc, sq_sc = refs[k + 6:k + 8]

        n_i = pl.program_id(0)
        h_i = pl.program_id(1)

        @pl.when(jnp.logical_and(n_i == 0, h_i == 0))
        def _init():
            sum_sc[...] = jnp.zeros_like(sum_sc)
            sq_sc[...] = jnp.zeros_like(sq_sc)

        # Assemble the (Wo, k*k*Cin) patch for this output row from the k padded
        # rows already resident in VMEM (pure VMEM slicing, no HBM replication).
        taps = []
        for di in range(k):
            row = x_refs[di][...]                            # (Wp, Cin) bf16
            for dj in range(k):
                if stride == 1:
                    taps.append(row[dj:dj + Wo, :])
                else:
                    taps.append(lax.slice(
                        row, (dj, 0),
                        (dj + (Wo - 1) * stride + 1, row.shape[1]),
                        (stride, 1)))
        patch = jnp.concatenate(taps, axis=-1)               # (Wo, K) bf16

        # bf16 x bf16 -> f32 accumulation on the MXU against the resident weight.
        y = jnp.dot(patch, w_ref[...], preferred_element_type=jnp.float32)
        y_ref[...] = y.astype(y_ref.dtype)                   # bf16 intermediate

        sum_sc[...] = sum_sc[...] + jnp.sum(y, axis=0, keepdims=True)
        sq_sc[...] = sq_sc[...] + jnp.sum(y * y, axis=0, keepdims=True)

        @pl.when(jnp.logical_and(n_i == pl.num_programs(0) - 1,
                                 h_i == pl.num_programs(1) - 1))
        def _finalize():
            mean = sum_sc[...] * inv_m
            # TODO(synk): E[y^2]-mean^2 can cancel for huge M; fine in f32 here.
            var = jnp.maximum(sq_sc[...] * inv_m - mean * mean, 0.0)
            istd = lax.rsqrt(var + BN_EPS)                   # EUP rsqrt
            scale = gamma_ref[...] * istd
            scale_ref[...] = scale
            shift_ref[...] = beta_ref[...] - mean * scale

    def _tap_spec(di):
        # Block size 1 along padded H -> index_map works at element granularity.
        return pl.BlockSpec((None, None, Wp, Cin),
                            lambda n, h, di=di: (n, h * stride + di, 0, 0))

    in_specs = [_tap_spec(di) for di in range(k)] + [
        pl.BlockSpec((K, Cout_pad), lambda n, h: (0, 0)),    # resident weight
        pl.BlockSpec((1, Cout_pad), lambda n, h: (0, 0)),    # gamma
        pl.BlockSpec((1, Cout_pad), lambda n, h: (0, 0)),    # beta
    ]
    out_specs = (
        pl.BlockSpec((None, None, Wo, Cout_pad), lambda n, h: (n, h, 0, 0)),
        pl.BlockSpec((1, Cout_pad), lambda n, h: (0, 0)),
        pl.BlockSpec((1, Cout_pad), lambda n, h: (0, 0)),
    )

    y4, scale_v, shift_v = pl.pallas_call(
        pass1_kernel,
        out_shape=(
            jax.ShapeDtypeStruct((N, Ho, Wo, Cout_pad), jnp.bfloat16),
            jax.ShapeDtypeStruct((1, Cout_pad), jnp.float32),
            jax.ShapeDtypeStruct((1, Cout_pad), jnp.float32),
        ),
        grid=(N, Ho),
        in_specs=in_specs,
        out_specs=out_specs,
        scratch_shapes=[
            pltpu.VMEM((1, Cout_pad), jnp.float32),          # per-channel sum
            pltpu.VMEM((1, Cout_pad), jnp.float32),          # per-channel sum of squares
        ],
        compiler_params=pltpu.CompilerParams(
            dimension_semantics=("arbitrary", "arbitrary"),  # cross-step BN reduction
            vmem_limit_bytes=vmem_cap,
        ),
    )(*([x_padded] * k), w_mat, gamma_p, beta_p)

    # ------------- Pass 2: y*scale + shift + LeakyReLU (parallel, lane-dense) -------------
    y_mat = y4.reshape(M, Cout_pad)                           # free row-major reshape
    TM2 = 2048 if M >= 2048 else _round_up(M, 8)

    def pass2_kernel(y_ref, scale_ref, shift_ref, o_ref):
        z = y_ref[...].astype(jnp.float32) * scale_ref[...] + shift_ref[...]
        o_ref[...] = jnp.where(z > 0, z, LEAKY_SLOPE * z)

    out_mat = pl.pallas_call(
        pass2_kernel,
        out_shape=jax.ShapeDtypeStruct((M, Cout_pad), jnp.float32),
        grid=(pl.cdiv(M, TM2),),
        in_specs=[
            pl.BlockSpec((TM2, Cout_pad), lambda i: (i, 0)),
            pl.BlockSpec((1, Cout_pad), lambda i: (0, 0)),
            pl.BlockSpec((1, Cout_pad), lambda i: (0, 0)),
        ],
        out_specs=pl.BlockSpec((TM2, Cout_pad), lambda i: (i, 0)),
        compiler_params=pltpu.CompilerParams(
            dimension_semantics=("parallel",),               # megacore-shardable epilogue
            vmem_limit_bytes=vmem_cap,
        ),
    )(y_mat, scale_v, shift_v)

    # --- glue: strip channel padding, back to NCHW ---
    out = out_mat[:, :Cout].reshape(N, Ho, Wo, Cout)
    return jnp.transpose(out, (0, 3, 1, 2))


def _reference(x_nchw, weight_oihw, gamma, beta, stride=1):
    """Reference forward pass (bf16 conv inputs, f32 accumulation / BN)."""
    k = weight_oihw.shape[2]
    pad = k // 2
    y = lax.conv_general_dilated(
        x_nchw.astype(jnp.bfloat16), weight_oihw.astype(jnp.bfloat16),
        window_strides=(stride, stride),
        padding=[(pad, pad), (pad, pad)],
        dimension_numbers=("NCHW", "OIHW", "NCHW"),
        preferred_element_type=jnp.float32,
    )
    mean = jnp.mean(y, axis=(0, 2, 3), keepdims=True)
    var = jnp.mean((y - mean) ** 2, axis=(0, 2, 3), keepdims=True)
    y = (y - mean) * lax.rsqrt(var + BN_EPS)
    y = y * gamma.reshape(1, -1, 1, 1) + beta.reshape(1, -1, 1, 1)
    return jnp.where(y > 0, y, LEAKY_SLOPE * y)


if __name__ == "__main__":
    key = jax.random.PRNGKey(0)
    kx, kwt, kg, kb = jax.random.split(key, 4)

    N, Cin, H, W = 2, 4, 16, 16
    Cout, ksize, stride = 8, 3, 1

    x = jax.random.normal(kx, (N, Cin, H, W), dtype=jnp.float32)
    # Deterministic synthetic parameters (shapes from nn.Conv2d / nn.BatchNorm2d).
    weight = jax.random.normal(kwt, (Cout, Cin, ksize, ksize), dtype=jnp.float32) * 0.1
    gamma = 0.5 + jax.random.uniform(kg, (Cout,), dtype=jnp.float32)
    beta = 0.1 * jax.random.normal(kb, (Cout,), dtype=jnp.float32)

    out = conv_bn_leaky(x, weight, gamma, beta, stride=stride)
    out = jax.block_until_ready(out)

    ref = _reference(x, weight, gamma, beta, stride=stride)
    assert out.shape == (N, Cout, H, W), out.shape
    max_err = float(jnp.max(jnp.abs(out - ref)))
    # Tolerance covers the bf16 pre-BN intermediate (review-requested) on top of
    # the bf16 conv inputs; real bugs (tap order / stats) produce O(1) errors.
    assert jnp.allclose(out, ref, rtol=2e-2, atol=2e-2), max_err

    print("KERNEL_OK")
</pallas_src>

<mosaic_0001>
module attributes {stable_mosaic.version = 11 : i64} {
  func.func @pass1_kernel(%arg0: i32, %arg1: i32, %arg2: memref<1x1x18x4xbf16, #tpu.memory_space<vmem>>, %arg3: memref<1x1x18x4xbf16, #tpu.memory_space<vmem>>, %arg4: memref<1x1x18x4xbf16, #tpu.memory_space<vmem>>, %arg5: memref<36x128xbf16, #tpu.memory_space<vmem>>, %arg6: memref<1x128xf32, #tpu.memory_space<vmem>>, %arg7: memref<1x128xf32, #tpu.memory_space<vmem>>, %arg8: memref<1x1x16x128xbf16, #tpu.memory_space<vmem>>, %arg9: memref<1x128xf32, #tpu.memory_space<vmem>>, %arg10: memref<1x128xf32, #tpu.memory_space<vmem>>, %arg11: memref<1x128xf32, #tpu.memory_space<vmem>>, %arg12: memref<1x128xf32, #tpu.memory_space<vmem>>) attributes {dimension_semantics = [#tpu.dimension_semantics<arbitrary>, #tpu.dimension_semantics<arbitrary>], iteration_bounds = array<i64: 2, 16>, scalar_prefetch = 0 : i64, scratch_operands = 2 : i64, tpu.core_type = #tpu.core_type<tc>, window_params = [{transform_indices = @transform_0, window_bounds = array<i64: 1, 1, 18, 4>}, {transform_indices = @transform_1, window_bounds = array<i64: 1, 1, 18, 4>}, {transform_indices = @transform_2, window_bounds = array<i64: 1, 1, 18, 4>}, {pipeline_mode = #tpu.pipeline_mode<synchronous>, transform_indices = @transform_3, window_bounds = array<i64: 36, 128>}, {pipeline_mode = #tpu.pipeline_mode<synchronous>, transform_indices = @transform_4, window_bounds = array<i64: 1, 128>}, {pipeline_mode = #tpu.pipeline_mode<synchronous>, transform_indices = @transform_5, window_bounds = array<i64: 1, 128>}, {transform_indices = @transform_6, window_bounds = array<i64: 1, 1, 16, 128>}, {pipeline_mode = #tpu.pipeline_mode<synchronous>, transform_indices = @transform_7, window_bounds = array<i64: 1, 128>}, {pipeline_mode = #tpu.pipeline_mode<synchronous>, transform_indices = @transform_8, window_bounds = array<i64: 1, 128>}]} {
    %c0_i32 = arith.constant 0 : i32
    %0 = arith.cmpi eq, %arg0, %c0_i32 : i32
    %c0_i32_0 = arith.constant 0 : i32
    %1 = arith.cmpi eq, %arg1, %c0_i32_0 : i32
    %2 = arith.andi %0, %1 : i1
    %3 = arith.extui %2 : i1 to i32
    %c0_i32_1 = arith.constant 0 : i32
    %4 = arith.cmpi ne, %3, %c0_i32_1 : i32
    scf.if %4 {
      %cst_30 = arith.constant 0.000000e+00 : f32
      %43 = vector.broadcast %cst_30 : f32 to vector<1x128xf32>
      %c0_31 = arith.constant 0 : index
      %c0_32 = arith.constant 0 : index
      %44 = vector.load %arg11[%c0_31, %c0_32] : memref<1x128xf32, #tpu.memory_space<vmem>>, vector<1x128xf32>
      tpu.vector_store %arg11[%c0_31, %c0_32], %43 {strides = array<i32>} : memref<1x128xf32, #tpu.memory_space<vmem>>, vector<1x128xf32>,
      %cst_33 = arith.constant 0.000000e+00 : f32
      %45 = vector.broadcast %cst_33 : f32 to vector<1x128xf32>
      %c0_34 = arith.constant 0 : index
      %c0_35 = arith.constant 0 : index
      %46 = vector.load %arg12[%c0_34, %c0_35] : memref<1x128xf32, #tpu.memory_space<vmem>>, vector<1x128xf32>
      tpu.vector_store %arg12[%c0_34, %c0_35], %45 {strides = array<i32>} : memref<1x128xf32, #tpu.memory_space<vmem>>, vector<1x128xf32>,
    } else {
    }
    %c0 = arith.constant 0 : index
    %c0_2 = arith.constant 0 : index
    %c0_3 = arith.constant 0 : index
    %c0_4 = arith.constant 0 : index
    %5 = vector.load %arg2[%c0, %c0_2, %c0_3, %c0_4] : memref<1x1x18x4xbf16, #tpu.memory_space<vmem>>, vector<1x1x18x4xbf16>
    %6 = vector.shape_cast %5 : vector<1x1x18x4xbf16> to vector<18x4xbf16>
    %7 = vector.extract_strided_slice %6 {offsets = [0, 0], sizes = [16, 4], strides = [1, 1]} : vector<18x4xbf16> to vector<16x4xbf16>
    %8 = vector.extract_strided_slice %6 {offsets = [1, 0], sizes = [16, 4], strides = [1, 1]} : vector<18x4xbf16> to vector<16x4xbf16>
    %9 = vector.extract_strided_slice %6 {offsets = [2, 0], sizes = [16, 4], strides = [1, 1]} : vector<18x4xbf16> to vector<16x4xbf16>
    %c0_5 = arith.constant 0 : index
    %c0_6 = arith.constant 0 : index
    %c0_7 = arith.constant 0 : index
    %c0_8 = arith.constant 0 : index
    %10 = vector.load %arg3[%c0_5, %c0_6, %c0_7, %c0_8] : memref<1x1x18x4xbf16, #tpu.memory_space<vmem>>, vector<1x1x18x4xbf16>
    %11 = vector.shape_cast %10 : vector<1x1x18x4xbf16> to vector<18x4xbf16>
    %12 = vector.extract_strided_slice %11 {offsets = [0, 0], sizes = [16, 4], strides = [1, 1]} : vector<18x4xbf16> to vector<16x4xbf16>
    %13 = vector.extract_strided_slice %11 {offsets = [1, 0], sizes = [16, 4], strides = [1, 1]} : vector<18x4xbf16> to vector<16x4xbf16>
    %14 = vector.extract_strided_slice %11 {offsets = [2, 0], sizes = [16, 4], strides = [1, 1]} : vector<18x4xbf16> to vector<16x4xbf16>
    %c0_9 = arith.constant 0 : index
    %c0_10 = arith.constant 0 : index
    %c0_11 = arith.constant 0 : index
    %c0_12 = arith.constant 0 : index
    %15 = vector.load %arg4[%c0_9, %c0_10, %c0_11, %c0_12] : memref<1x1x18x4xbf16, #tpu.memory_space<vmem>>, vector<1x1x18x4xbf16>
    %16 = vector.shape_cast %15 : vector<1x1x18x4xbf16> to vector<18x4xbf16>
    %17 = vector.extract_strided_slice %16 {offsets = [0, 0], sizes = [16, 4], strides = [1, 1]} : vector<18x4xbf16> to vector<16x4xbf16>
    %18 = vector.extract_strided_slice %16 {offsets = [1, 0], sizes = [16, 4], strides = [1, 1]} : vector<18x4xbf16> to vector<16x4xbf16>
    %19 = vector.extract_strided_slice %16 {offsets = [2, 0], sizes = [16, 4], strides = [1, 1]} : vector<18x4xbf16> to vector<16x4xbf16>
    %20 = tpu.concatenate %7, %8, %9, %12, %13, %14, %17, %18, %19 in 1 : vector<16x4xbf16>, vector<16x4xbf16>, vector<16x4xbf16>, vector<16x4xbf16>, vector<16x4xbf16>, vector<16x4xbf16>, vector<16x4xbf16>, vector<16x4xbf16>, vector<16x4xbf16> -> vector<16x36xbf16>
    %c0_13 = arith.constant 0 : index
    %c0_14 = arith.constant 0 : index
    %21 = vector.load %arg5[%c0_13, %c0_14] : memref<36x128xbf16, #tpu.memory_space<vmem>>, vector<36x128xbf16>
    %cst = arith.constant dense<0.000000e+00> : vector<16x128xf32>
    %22 = tpu.matmul %20, %21, %cst {dimension_numbers = #tpu.dot_dimension_numbers<[1], [0], [0], [1], [0, 0, 1, 1], [], []>} : vector<16x36xbf16>, vector<36x128xbf16>, vector<16x128xf32> -> vector<16x128xf32>
    %23 = arith.truncf %22 : vector<16x128xf32> to vector<16x128xbf16>
    %c0_15 = arith.constant 0 : index
    %c0_16 = arith.constant 0 : index
    %c0_17 = arith.constant 0 : index
    %c0_18 = arith.constant 0 : index
    %24 = vector.load %arg8[%c0_15, %c0_16, %c0_17, %c0_18] : memref<1x1x16x128xbf16, #tpu.memory_space<vmem>>, vector<1x1x16x128xbf16>
    %25 = vector.shape_cast %24 : vector<1x1x16x128xbf16> to vector<16x128xbf16>
    %26 = vector.shape_cast %23 : vector<16x128xbf16> to vector<1x1x16x128xbf16>
    tpu.vector_store %arg8[%c0_15, %c0_16, %c0_17, %c0_18], %26 {strides = array<i32>} : memref<1x1x16x128xbf16, #tpu.memory_space<vmem>>, vector<1x1x16x128xbf16>,
    %c0_19 = arith.constant 0 : index
    %c0_20 = arith.constant 0 : index
    %27 = vector.load %arg11[%c0_19, %c0_20] : memref<1x128xf32, #tpu.memory_space<vmem>>, vector<1x128xf32>
    %cst_21 = arith.constant dense<0.000000e+00> : vector<128xf32>
    %28 = vector.multi_reduction <add>, %22, %cst_21 [0] : vector<16x128xf32> to vector<128xf32>
    %29 = vector.shape_cast %28 : vector<128xf32> to vector<1x128xf32>
    %30 = arith.addf %27, %29 : vector<1x128xf32>
    %c0_22 = arith.constant 0 : index
    %c0_23 = arith.constant 0 : index
    %31 = vector.load %arg11[%c0_22, %c0_23] : memref<1x128xf32, #tpu.memory_space<vmem>>, vector<1x128xf32>
    tpu.vector_store %arg11[%c0_22, %c0_23], %30 {strides = array<i32>} : memref<1x128xf32, #tpu.memory_space<vmem>>, vector<1x128xf32>,
    %c0_24 = arith.constant 0 : index
    %c0_25 = arith.constant 0 : index
    %32 = vector.load %arg12[%c0_24, %c0_25] : memref<1x128xf32, #tpu.memory_space<vmem>>, vector<1x128xf32>
    %33 = arith.mulf %22, %22 : vector<16x128xf32>
    %cst_26 = arith.constant dense<0.000000e+00> : vector<128xf32>
    %34 = vector.multi_reduction <add>, %33, %cst_26 [0] : vector<16x128xf32> to vector<128xf32>
    %35 = vector.shape_cast %34 : vector<128xf32> to vector<1x128xf32>
    %36 = arith.addf %32, %35 : vector<1x128xf32>
    %c0_27 = arith.constant 0 : index
    %c0_28 = arith.constant 0 : index
    %37 = vector.load %arg12[%c0_27, %c0_28] : memref<1x128xf32, #tpu.memory_space<vmem>>, vector<1x128xf32>
    tpu.vector_store %arg12[%c0_27, %c0_28], %36 {strides = array<i32>} : memref<1x128xf32, #tpu.memory_space<vmem>>, vector<1x128xf32>,
    %c1_i32 = arith.constant 1 : i32
    %38 = arith.cmpi eq, %arg0, %c1_i32 : i32
    %c15_i32 = arith.constant 15 : i32
    %39 = arith.cmpi eq, %arg1, %c15_i32 : i32
    %40 = arith.andi %38, %39 : i1
    %41 = arith.extui %40 : i1 to i32
    %c0_i32_29 = arith.constant 0 : i32
    %42 = arith.cmpi ne, %41, %c0_i32_29 : i32
    scf.if %42 {
      %c0_30 = arith.constant 0 : index
      %c0_31 = arith.constant 0 : index
      %43 = vector.load %arg11[%c0_30, %c0_31] : memref<1x128xf32, #tpu.memory_space<vmem>>, vector<1x128xf32>
      %cst_32 = arith.constant 0.001953125 : f32
      %44 = vector.broadcast %cst_32 : f32 to vector<1x128xf32>
      %45 = arith.mulf %43, %44 : vector<1x128xf32>
      %c0_33 = arith.constant 0 : index
      %c0_34 = arith.constant 0 : index
      %46 = vector.load %arg12[%c0_33, %c0_34] : memref<1x128xf32, #tpu.memory_space<vmem>>, vector<1x128xf32>
      %cst_35 = arith.constant 0.001953125 : f32
      %47 = vector.broadcast %cst_35 : f32 to vector<1x128xf32>
      %48 = arith.mulf %46, %47 : vector<1x128xf32>
      %49 = arith.mulf %45, %45 : vector<1x128xf32>
      %50 = arith.subf %48, %49 : vector<1x128xf32>
      %cst_36 = arith.constant 0.000000e+00 : f32
      %51 = vector.broadcast %cst_36 : f32 to vector<1x128xf32>
      %52 = arith.maximumf %50, %51 : vector<1x128xf32>
      %cst_37 = arith.constant 9.99999974E-6 : f32
      %53 = vector.broadcast %cst_37 : f32 to vector<1x128xf32>
      %54 = arith.addf %52, %53 : vector<1x128xf32>
      %55 = math.rsqrt %54 : vector<1x128xf32>
      %c0_38 = arith.constant 0 : index
      %c0_39 = arith.constant 0 : index
      %56 = vector.load %arg6[%c0_38, %c0_39] : memref<1x128xf32, #tpu.memory_space<vmem>>, vector<1x128xf32>
      %57 = arith.mulf %56, %55 : vector<1x128xf32>
      %c0_40 = arith.constant 0 : index
      %c0_41 = arith.constant 0 : index
      %58 = vector.load %arg9[%c0_40, %c0_41] : memref<1x128xf32, #tpu.memory_space<vmem>>, vector<1x128xf32>
      tpu.vector_store %arg9[%c0_40, %c0_41], %57 {strides = array<i32>} : memref<1x128xf32, #tpu.memory_space<vmem>>, vector<1x128xf32>,
      %c0_42 = arith.constant 0 : index
      %c0_43 = arith.constant 0 : index
      %59 = vector.load %arg7[%c0_42, %c0_43] : memref<1x128xf32, #tpu.memory_space<vmem>>, vector<1x128xf32>
      %60 = arith.mulf %45, %57 : vector<1x128xf32>
      %61 = arith.subf %59, %60 : vector<1x128xf32>
      %c0_44 = arith.constant 0 : index
      %c0_45 = arith.constant 0 : index
      %62 = vector.load %arg10[%c0_44, %c0_45] : memref<1x128xf32, #tpu.memory_space<vmem>>, vector<1x128xf32>
      tpu.vector_store %arg10[%c0_44, %c0_45], %61 {strides = array<i32>} : memref<1x128xf32, #tpu.memory_space<vmem>>, vector<1x128xf32>,
    } else {
    }
    return
  }
  func.func @transform_0(%arg0: i32, %arg1: i32) -> (i32, i32, i32, i32) {
    %c1_i32 = arith.constant 1 : i32
    %0 = arith.muli %arg1, %c1_i32 : i32
    %c0_i32 = arith.constant 0 : i32
    %1 = arith.addi %0, %c0_i32 : i32
    %c0_i32_0 = arith.constant 0 : i32
    %c0_i32_1 = arith.constant 0 : i32
    %c0_i32_2 = arith.constant 0 : i32
    return %arg0, %1, %c0_i32_0, %c0_i32_1 : i32, i32, i32, i32
  }
  func.func @transform_1(%arg0: i32, %arg1: i32) -> (i32, i32, i32, i32) {
    %c1_i32 = arith.constant 1 : i32
    %0 = arith.muli %arg1, %c1_i32 : i32
    %c1_i32_0 = arith.constant 1 : i32
    %1 = arith.addi %0, %c1_i32_0 : i32
    %c0_i32 = arith.constant 0 : i32
    %c0_i32_1 = arith.constant 0 : i32
    %c0_i32_2 = arith.constant 0 : i32
    return %arg0, %1, %c0_i32, %c0_i32_1 : i32, i32, i32, i32
  }
  func.func @transform_2(%arg0: i32, %arg1: i32) -> (i32, i32, i32, i32) {
    %c1_i32 = arith.constant 1 : i32
    %0 = arith.muli %arg1, %c1_i32 : i32
    %c2_i32 = arith.constant 2 : i32
    %1 = arith.addi %0, %c2_i32 : i32
    %c0_i32 = arith.constant 0 : i32
    %c0_i32_0 = arith.constant 0 : i32
    %c0_i32_1 = arith.constant 0 : i32
    return %arg0, %1, %c0_i32, %c0_i32_0 : i32, i32, i32, i32
  }
  func.func @transform_3(%arg0: i32, %arg1: i32) -> (i32, i32) {
    %c0_i32 = arith.constant 0 : i32
    %c0_i32_0 = arith.constant 0 : i32
    %c0_i32_1 = arith.constant 0 : i32
    return %c0_i32, %c0_i32_0 : i32, i32
  }
  func.func @transform_4(%arg0: i32, %arg1: i32) -> (i32, i32) {
    %c0_i32 = arith.constant 0 : i32
    %c0_i32_0 = arith.constant 0 : i32
    %c0_i32_1 = arith.constant 0 : i32
    return %c0_i32, %c0_i32_0 : i32, i32
  }
  func.func @transform_5(%arg0: i32, %arg1: i32) -> (i32, i32) {
    %c0_i32 = arith.constant 0 : i32
    %c0_i32_0 = arith.constant 0 : i32
    %c0_i32_1 = arith.constant 0 : i32
    return %c0_i32, %c0_i32_0 : i32, i32
  }
  func.func @transform_6(%arg0: i32, %arg1: i32) -> (i32, i32, i32, i32) {
    %c0_i32 = arith.constant 0 : i32
    %c0_i32_0 = arith.constant 0 : i32
    %c0_i32_1 = arith.constant 0 : i32
    return %arg0, %arg1, %c0_i32, %c0_i32_0 : i32, i32, i32, i32
  }
  func.func @transform_7(%arg0: i32, %arg1: i32) -> (i32, i32) {
    %c0_i32 = arith.constant 0 : i32
    %c0_i32_0 = arith.constant 0 : i32
    %c0_i32_1 = arith.constant 0 : i32
    return %c0_i32, %c0_i32_0 : i32, i32
  }
  func.func @transform_8(%arg0: i32, %arg1: i32) -> (i32, i32) {
    %c0_i32 = arith.constant 0 : i32
    %c0_i32_0 = arith.constant 0 : i32
    %c0_i32_1 = arith.constant 0 : i32
    return %c0_i32, %c0_i32_0 : i32, i32
  }
}

module attributes {stable_mosaic.version = 11 : i64} {
  func.func @pass2_kernel(%arg0: i32, %arg1: memref<512x128xbf16, #tpu.memory_space<vmem>>, %arg2: memref<1x128xf32, #tpu.memory_space<vmem>>, %arg3: memref<1x128xf32, #tpu.memory_space<vmem>>, %arg4: memref<512x128xf32, #tpu.memory_space<vmem>>) attributes {dimension_semantics = [#tpu.dimension_semantics<parallel>], iteration_bounds = array<i64: 1>, scalar_prefetch = 0 : i64, scratch_operands = 0 : i64, tpu.core_type = #tpu.core_type<tc>, window_params = [{transform_indices = @transform_0, window_bounds = array<i64: 512, 128>}, {pipeline_mode = #tpu.pipeline_mode<synchronous>, transform_indices = @transform_1, window_bounds = array<i64: 1, 128>}, {pipeline_mode = #tpu.pipeline_mode<synchronous>, transform_indices = @transform_2, window_bounds = array<i64: 1, 128>}, {transform_indices = @transform_3, window_bounds = array<i64: 512, 128>}]} {
    %c0 = arith.constant 0 : index
    %c0_0 = arith.constant 0 : index
    %0 = vector.load %arg1[%c0, %c0_0] : memref<512x128xbf16, #tpu.memory_space<vmem>>, vector<512x128xbf16>
    %1 = arith.extf %0 : vector<512x128xbf16> to vector<512x128xf32>
    %c0_1 = arith.constant 0 : index
    %c0_2 = arith.constant 0 : index
    %2 = vector.load %arg2[%c0_1, %c0_2] : memref<1x128xf32, #tpu.memory_space<vmem>>, vector<1x128xf32>
    %3 = vector.broadcast %2 : vector<1x128xf32> to vector<512x128xf32>
    %4 = arith.mulf %1, %3 : vector<512x128xf32>
    %c0_3 = arith.constant 0 : index
    %c0_4 = arith.constant 0 : index
    %5 = vector.load %arg3[%c0_3, %c0_4] : memref<1x128xf32, #tpu.memory_space<vmem>>, vector<1x128xf32>
    %6 = vector.broadcast %5 : vector<1x128xf32> to vector<512x128xf32>
    %7 = arith.addf %4, %6 : vector<512x128xf32>
    %cst = arith.constant 0.000000e+00 : f32
    %8 = vector.broadcast %cst : f32 to vector<512x128xf32>
    %9 = arith.cmpf ogt, %7, %8 : vector<512x128xf32>
    %cst_5 = arith.constant 0.00999999977 : f32
    %10 = vector.broadcast %cst_5 : f32 to vector<512x128xf32>
    %11 = arith.mulf %10, %7 : vector<512x128xf32>
    %12 = arith.select %9, %7, %11 : vector<512x128xi1>, vector<512x128xf32>
    %c0_6 = arith.constant 0 : index
    %c0_7 = arith.constant 0 : index
    %13 = vector.load %arg4[%c0_6, %c0_7] : memref<512x128xf32, #tpu.memory_space<vmem>>, vector<512x128xf32>
    tpu.vector_store %arg4[%c0_6, %c0_7], %12 {strides = array<i32>} : memref<512x128xf32, #tpu.memory_space<vmem>>, vector<512x128xf32>,
    return
  }
  func.func @transform_0(%arg0: i32) -> (i32, i32) {
    %c0_i32 = arith.constant 0 : i32
    %c0_i32_0 = arith.constant 0 : i32
    return %arg0, %c0_i32 : i32, i32
  }
  func.func @transform_1(%arg0: i32) -> (i32, i32) {
    %c0_i32 = arith.constant 0 : i32
    %c0_i32_0 = arith.constant 0 : i32
    %c0_i32_1 = arith.constant 0 : i32
    return %c0_i32, %c0_i32_0 : i32, i32
  }
  func.func @transform_2(%arg0: i32) -> (i32, i32) {
    %c0_i32 = arith.constant 0 : i32
    %c0_i32_0 = arith.constant 0 : i32
    %c0_i32_1 = arith.constant 0 : i32
    return %c0_i32, %c0_i32_0 : i32, i32
  }
  func.func @transform_3(%arg0: i32) -> (i32, i32) {
    %c0_i32 = arith.constant 0 : i32
    %c0_i32_0 = arith.constant 0 : i32
    return %arg0, %c0_i32 : i32, i32
  }
}

</mosaic_0001>

<bundles_post_ra>
// kernel: conv_bn_leaky.2
= control target key start
LH: loop header
LB: loop body
LE: loop exit
PB: predicated region body
PF: predicated region fallthrough
CT: control target
= control target key end

     0   :  { %s988_s27 = smov 0   ;;  %s990_s28 = smov 0   ;;  %s1103_s0 = inlined_call_operand.vmem [shape: bf16[2,18,18,4], index: 0, kind: input, shape index: {}, may-alias: {0,1,2}]   ;;  %s1104_s1 = inlined_call_operand.vmem [shape: bf16[2,18,18,4], index: 1, kind: input, shape index: {}, may-alias: {0,1,2}]   ;;  %s1105_s2 = inlined_call_operand.vmem [shape: bf16[2,18,18,4], index: 2, kind: input, shape index: {}, may-alias: {0,1,2}]   ;;  %s1106_s3 = inlined_call_operand.vmem [shape: bf16[36,128], index: 3, kind: input, shape index: {}]   ;;  %s1107_s4 = inlined_call_operand.vmem [shape: f32[1,128], index: 4, kind: input, shape index: {}]   ;;  %s1108_s5 = inlined_call_operand.vmem [shape: f32[1,128], index: 5, kind: input, shape index: {}]   ;;  %s1109_s6 = inlined_call_operand.vmem [shape: bf16[2,16,16,128], index: 6, kind: output, shape index: {0}]   ;;  %s1110_s7 = inlined_call_operand.vmem [shape: f32[1,128], index: 7, kind: output, shape index: {1}]   ;;  %s1111_s8 = inlined_call_operand.vmem [shape: f32[1,128], index: 8, kind: output, shape index: {2}]  }
   0x1   :  { %1115 = sst [smem:[#allocation9_spill]] %s1103_s0  ;;  %s992_s29 = smov 0  }
   0x2   :  { %1116 = sst [smem:[#allocation10_spill]] %s1111_s8  ;;  %s994_s30 = smov 0  }
   0x3   :  { %s996_s9 = smov 0  }
   0x4 LB: > { %1117 = sst [smem:[#allocation4_spill]] %s924_s29  ;;  %s28_s10 = sadd.s32 1, %s924_s29  ;;  %s932_s9 = sphi %s996_s9, %s19_s9   ;;  %s928_s30 = sphi %s994_s30, %s1129_s30   ;;  %s924_s29 = sphi %s992_s29, %s1128_s29   ;;  %s920_s28 = sphi %s990_s28, %s1127_s28   ;;  %s916_s27 = sphi %s988_s27, %s1126_s27  }
   0x5   : > { %1118 = sst [smem:[#allocation5_spill]] %s928_s30  ;;  %s31_s11 = sadd.s32 1, %s928_s30 }
   0x6   : > { %1119 = sst [smem:[#allocation6_spill]] %s932_s9  ;;  %p29_p0 = scmp.ge.s32.totalorder %s28_s10, 16 }
   0x7   : > { %p799_p1 = scmp.ge.s32.totalorder %s932_s9, 1  ;;  %p317_p2 = scmp.lt.s32.totalorder %s932_s9, 33 }
   0x8   : > { %s1131_s10 = smov (%p29_p0, %s28_s10), 0  ;;  %s1133_s11 = smov (!%p29_p0, %s31_s11), %s928_s30 }
   0x9   : > { %1120 = sst [smem:[#allocation7_spill]] %s1131_s10  ;;  %p318_p3 = pnand %p799_p1, %p317_p2 }
   0xa   : > { %p33_p4 = scmp.ge.s32.totalorder %s1133_s11, 2  ;;  %p379_p5 = scmp.lt.s32.totalorder (!%p318_p3), %s920_s28, 1 }
   0xb   : > { %321 = sbr.rel (%p318_p3) target bundleno = 373 (0x175), region = 44  ;;  %p381_p6 = scmp.lt.s32.totalorder (!%p318_p3), %s916_s27, 17 }
   0xc   : > { %s1135_s11 = smov (%p33_p4, %s1133_s11), 0  ;;  %s388_s12 = sadd.s32 (!%p318_p3), 1, %s916_s27 }
   0xd   : > { %1121 = sst [smem:[#allocation8_spill]] %s1135_s11  ;;  %s399_s13 = sadd.s32 (!%p318_p3), 2, %s916_s27 }
   0xe   : > { %p391_p7 = scmp.lt.s32.totalorder (!%p318_p3), %s388_s12, 17  ;;  %p402_p8 = scmp.lt.s32.totalorder (!%p318_p3), %s399_s13, 17 }
   0xf   : > { %s1122_s0 = sld [smem:[#allocation9_spill]] (!%p318_p3)  ;;  %p412_p9 = scmp.lt.s32.totalorder (!%p318_p3), %s916_s27, 15 }
  0x10   : > { %s380_s14 = scalar_select %p379_p5, %s920_s28, 1 }
  0x11   : > { %s382_s15 = scalar_select %p381_p6, %s916_s27, 17 }
  0x12   : > { %s840_s16 = smul.u32 54, %s380_s14  ;;  %s1137_s12 = smov (!%p391_p7, %s388_s12), 17 }
  0x13   : > { %s839_s17 = smul.u32 3, %s382_s15  ;;  %p420_p10 = scmp.eq.s32.totalorder %s920_s28, 0 }
  0x14   : > { %s841_s20 = smul.u32 3, %s1137_s12  ;;  %p421_p11 = scmp.eq.s32.totalorder %s916_s27, 0 }
  0x15   : > { %s385_s18 = sadd.s32 %s840_s16, %s839_s17  ;;  %s804_s30 = sshll.u32 %s380_s14, 5 }
  0x16   : > { %s800_s19 = sshll.u32 %s385_s18, 2  ;;  %s395_s24 = sadd.s32 %s841_s20, %s840_s16 }
  0x17   : > { %s387_s23 = scalar_lea.vmem %s1122_s0, %s800_s19  ;;  %s801_s25 = sshll.u32 %s395_s24, 2 }
  0x18   : > { %s397_s10 = scalar_lea.vmem %s1104_s1, %s801_s25  ;;  %s1139_s13 = smov (!%p402_p8, %s399_s13), 17 }
  0x19   : > { %s413_s15 = scalar_select %p412_p9, %s916_s27, 15 }
  0x1a   : > { %s842_s17 = smul.u32 3, %s1139_s13  ;;  %p422_p12 = pnand %p421_p11, %p420_p10 }
  0x1b   : > { %s803_s18 = sshll.u32 %s413_s15, 1 }
  0x1c   : > { %s406_s12 = sadd.s32 %s842_s17, %s840_s16  ;;  %s416_s29 = sadd.s32 %s804_s30, %s803_s18 }
  0x1d   : > { %s802_s9 = sshll.u32 %s406_s12, 2  ;;  %s805_s21 = sshll.u32 %s416_s29, 2 }
  0x1e   : > { %s408_s20 = scalar_lea.vmem %s1105_s2, %s802_s9  ;;  %s1044_s8 = scalar_lea.vmem %s1109_s6, %s805_s21 }
  0x1f   : > { %425 = sbr.rel (%p422_p12) target bundleno = 39 (0x27), region = 48 }
  0x24   : > { %v934_v0 = vmov 0.0  }
  0x25   : > { %426 = vst [vmem:[#allocation2] sm:$0x1] %v934_v0 }
  0x26   : > { %427 = vst [vmem:[#allocation3] sm:$0x1] %v934_v0 }
  0x27 PF: > { %v1046_v1 = vld [vmem:[%s387_s23] sm:$0xff]  ;;  %v430_v2 = vld [vmem:[%s387_s23 + $0x8] sm:$0x1]  ;;  %s935_s29 = smov 12   ;;  %vm460_vm0 = vcmask 1046528   ;;  %s936_s0 = smov 8  }
  0x28   : > { %v830_v3 = vld [vmem:[%s397_s10] sm:$0xff]  ;;  %v443_v4 = vunpack.c.l.b16 %v430_v2  ;;  %v433_v5 = vld [vmem:[%s397_s10 + $0x8] sm:$0x1]  ;;  %v449_v6 = vshll.u32 %v1046_v1, 16  ;;  %v461_v9 = vrot.slane %v1046_v1, 1  ;;  %v447_v13 = vshrl.u32 %v1046_v1, 16 }
  0x29   : > { %471 = vrot.lane.b32.xlu1 %v830_v3, %s935_s29  ;;  %v474_v7 = vunpack.c.l.b16 %v433_v5  ;;  %v477_v10 = vshrl.u32 %v830_v3, 16  ;;  %v479_v11 = vshll.u32 %v830_v3, 16  ;;  %v436_v12 = vld [vmem:[%s408_s20 + $0x8] sm:$0x1]  ;;  %v831_v19 = vld [vmem:[%s408_s20] sm:$0xff]  ;;  %v490_v22 = vrot.slane %v830_v3, 1 }
  0x2a   : > { %v444_v8 = vpack.c.b16 %v443_v4, %v443_v4  ;;  %v451_v14 = vrot.slane %v449_v6, 1  ;;  %v503_v20 = vunpack.c.l.b16 %v436_v12  ;;  %vm445_vm1 = vsmask.f32 7424  ;;  %s937_s30 = smov 16   ;;  %s938_s9 = smov 20   ;;  %v833_v47 = vld [vmem:[%s1106_s3 + $0x8] sm:$0xff] }
  0x2b   : > { %v475_v15 = vpack.c.b16 %v474_v7, %v474_v7  ;;  %v481_v18 = vrot.slane %v479_v11, 1  ;;  %v508_v30 = vshll.u32 %v831_v19, 16  ;;  %v519_v33 = vrot.slane %v831_v19, 1  ;;  %s939_s10 = smov 4   ;;  %s940_s11 = smov 32   ;;  %v832_v48 = vld [vmem:[%s1106_s3] sm:$0xff] }
  0x2c   : > { %v462_v16 = vrot.slane %v444_v8, 1  ;;  %v454_v17 = vshll.u32 %v444_v8, 16  ;;  %v452_v27 = vor.u32 %v451_v14, %v447_v13  ;;  %v504_v29 = vpack.c.b16 %v503_v20, %v503_v20  ;;  %s941_s13 = smov 24   ;;  %s942_s14 = smov 28   ;;  %v552_v43 = vld [vmem:[%s1106_s3 + $0x10] sm:$0x3] }
  0x2d   : > { %v484_v21 = vshll.u32 %v475_v15, 16  ;;  %v482_v24 = vor.u32 %v481_v18, %v477_v10  ;;  %v491_v26 = vrot.slane %v475_v15, 1  ;;  %v506_v36 = vshrl.u32 %v831_v19, 16  ;;  %p615_p13 = scmp.eq.s32.totalorder %s920_s28, 1  ;;  %p616_p0 = scmp.eq.s32.totalorder %s916_s27, 15 }
  0x2e   : > { %v463_v23 = vsel %vm460_vm0, %v461_v9, %v462_v16  ;;  %v456_v28 = vrot.slane %v454_v17, 1  ;;  %v520_v34 = vrot.slane %v504_v29, 1  ;;  %v510_v37 = vrot.slane %v508_v30, 1  ;;  %v593_v17 = vld [vmem:[#allocation2] sm:$0x1] }
  0x2f   : > { %464 = vrot.lane.b32.xlu0 %v463_v23, %s936_s0  ;;  %v486_v25 = vrot.slane %v484_v21, 1  ;;  %v492_v32 = vsel %vm460_vm0, %v490_v22, %v491_v26  ;;  %v513_v38 = vshll.u32 %v504_v29, 16  ;;  %v562_v44 = vunpack.c.l.b16 %v552_v43  ;;  %p1069_p1 = pnand %p616_p0, %p615_p13  ;;  %v603_v20 = vld [vmem:[#allocation3] sm:$0x1] }
  0x30   : > { %493 = vrot.lane.b32.xlu2 %v492_v32, %s938_s9  ;;  %v457_v35 = vsel %vm445_vm1, %v452_v27, %v456_v28  ;;  %v521_v39 = vsel %vm460_vm0, %v519_v33, %v520_v34  ;;  %v511_v40 = vor.u32 %v510_v37, %v506_v36  ;;  %vm571_vm2 = vcmask 1041408   ;;  %s1124_s24 = sld [smem:[#allocation10_spill]] (!%p1069_p1) }
  0x31   : > { %v487_v31 = vsel %vm445_vm1, %v482_v24, %v486_v25  ;;  %v515_v41 = vrot.slane %v513_v38, 1  ;;  %v565_v45 = vpack.c.b16 %v562_v44, %v562_v44  ;;  %vm524_vm3 = vcmask 31744  }
  0x32   : > { %488 = vrot.lane.b32.xlu1 %v487_v31, %s937_s30  ;;  %vm527_vm4 = vcmask 64512   ;;  %vm530_vm5 = vcmask 97280   ;;  %vm533_vm6 = vcmask 130048   ;;  %vm536_vm7 = vcmask 162816  }
  0x33   : > { %v516_v42 = vsel %vm445_vm1, %v511_v40, %v515_v41  ;;  %v573_v46 = vsel %vm571_vm2, %v565_v45, 0  ;;  %vm539_vm8 = vcmask 195584   ;;  %vm542_vm9 = vcmask 228352  }
  0x34   : > { %580 = vmatpush.bf16.msra.mxu0 %v573_v46  ;;  %vm545_vm10 = vcmask 261120   ;;  %vm568_vm11 = vcmask 293888  }
  0x37   : > { %458 = vrot.lane.b32.xlu0 %v457_v35, %s939_s10 }
  0x38   : > { %500 = vrot.lane.b32.xlu2 %v831_v19, %s941_s13  ;;  %581 = vmatpush.bf16.msra.mxu0 %v833_v47 }
  0x3a   : > { %522 = vrot.lane.b32.xlu1 %v521_v39, %s940_s11 }
  0x3c   : > { %582 = vmatpush.bf16.msra.mxu0 %v832_v48 }
  0x3f   : > { %517 = vrot.lane.b32.xlu0 %v516_v42, %s942_s14 }
  0x8a   : > { %v494_v51 = vpop.permute.xlu2 %493 }
  0x92   : > { %v501_v58 = vpop.permute.xlu2 %500 }
  0x9b   : > { %v472_v49 = vpop.permute.xlu1 %471 }
  0xa1   : > { %v465_v50 = vpop.permute.xlu0 %464 }
  0xa4   : > { %v489_v52 = vpop.permute.xlu1 %488 }
  0xa9   : > { %v459_v53 = vpop.permute.xlu0 %458 }
  0xaa   : > { %v526_v54 = vsel %vm524_vm3, %v1046_v1, %v459_v53 }
  0xab   : > { %v529_v55 = vsel %vm527_vm4, %v526_v54, %v465_v50 }
  0xac   : > { %v532_v56 = vsel %vm530_vm5, %v529_v55, %v472_v49  ;;  %v523_v60 = vpop.permute.xlu1 %522 }
  0xad   : > { %v535_v57 = vsel %vm533_vm6, %v532_v56, %v489_v52 }
  0xae   : > { %v538_v59 = vsel %vm536_vm7, %v535_v57, %v494_v51 }
  0xaf   : > { %v541_v61 = vsel %vm539_vm8, %v538_v59, %v501_v58 }
  0xb1   : > { %v518_v62 = vpop.permute.xlu0 %517 }
  0xb2   : > { %v544_v63 = vsel %vm542_vm9, %v541_v61, %v518_v62 }
  0xb3   : > { %v547_v0 = vsel %vm545_vm10, %v544_v63, %v523_v60 }
  0xb4   : > { %826 = vmatmul.msk.bf16.vlgmr.msra.gmra.mxu0 %vm568_vm11, %v547_v0 }
 0x131   : > { %v584_v1 = vpop.f32.mrf.mxu0 }
 0x132   : > { %v604_v3 = vmul.f32 %v584_v1, %v584_v1 }
 0x139   : > { %v586_v2 = vpop.f32.mrf.mxu0 }
 0x13a   : > { %v837_v4 = vpack.c.bf16 %v586_v2, %v584_v1  ;;  %v594_v5 = vadd.f32 %v586_v2, %v584_v1  ;;  %v605_v6 = vmul.f32 %v586_v2, %v586_v2 }
 0x13c   : > { %838 = vst [vmem:[%s1044_s8] sm:$0xff] %v837_v4   ;;  %v595_v7 = vrot.slane %v594_v5, 4  ;;  %v606_v8 = vadd.f32 %v605_v6, %v604_v3 }
 0x13e   : > { %v596_v9 = vadd.f32 %v595_v7, %v594_v5  ;;  %v607_v10 = vrot.slane %v606_v8, 4 }
 0x140   : > { %v597_v11 = vrot.slane %v596_v9, 2  ;;  %v608_v12 = vadd.f32 %v607_v10, %v606_v8 }
 0x142   : > { %v598_v13 = vadd.f32 %v597_v11, %v596_v9  ;;  %v609_v14 = vrot.slane %v608_v12, 2 }
 0x144   : > { %v599_v15 = vrot.slane %v598_v13, 1  ;;  %v610_v16 = vadd.f32 %v609_v14, %v608_v12 }
 0x146   : > { %v600_v18 = vadd.f32 %v599_v15, %v598_v13  ;;  %v611_v19 = vrot.slane %v610_v16, 1 }
 0x148   : > { %v601_v21 = vadd.f32 %v600_v18, %v593_v17  ;;  %v612_v22 = vadd.f32 %v611_v19, %v610_v16  ;;  %620 = sbr.rel (%p1069_p1) target bundleno = 373 (0x175), region = 52 }
 0x14a   : > { %602 = vst [vmem:[#allocation2] sm:$0x1] %v601_v21  ;;  %v613_v23 = vadd.f32 %v612_v22, %v603_v20 }
 0x14c   : > { %614 = vst [vmem:[#allocation3] sm:$0x1] %v613_v23 }
 0x14d   : > { %v639_v38 = vld [vmem:[%s1107_s4] sm:$0x1] }
 0x14e   : > { %v642_v41 = vld [vmem:[%s1108_s5] sm:$0x1] }
 0x151   : > { %v621_v24 = vld [vmem:[#allocation2] sm:$0x1] }
 0x152   : > { %v622_v26 = vmul.f32 0.001953125, %v621_v24 }
 0x153   : > { %v623_v25 = vld [vmem:[#allocation3] sm:$0x1] }
 0x154   : > { %v624_v27 = vmul.f32 0.001953125, %v623_v25  ;;  %v625_v28 = vmul.f32 %v622_v26, %v622_v26 }
 0x156   : > { %v626_v29 = vsub.f32 %v624_v27, %v625_v28 }
 0x158   : > { %v627_v30 = vmax.f32 %v626_v29, 0.0 }
 0x15a   : > { %v628_v31 = vadd.f32 1e-05, %v627_v30 }
 0x15c   : > { %892 = vrsqrt.f32 %v628_v31  ;;  %vm635_vm12 = vweird.f32 %v628_v31 }
 0x162   : > { %v893_v32 = vpop.eup %892 }
 0x163   : > { %v630_v33 = vmul.f32 %v893_v32, %v628_v31  ;;  %vm636_vm13 = vweird.f32 %v893_v32 }
 0x164   : > { %vm637_vm14 = vmor %vm635_vm12, %vm636_vm13 }
 0x165   : > { %v631_v34 = vmul.f32 %v893_v32, %v630_v33 }
 0x167   : > { %v632_v35 = vmul.f32 0.5, %v631_v34 }
 0x169   : > { %v633_v36 = vsub.f32 1.5, %v632_v35 }
 0x16b   : > { %v634_v37 = vmul.f32 %v893_v32, %v633_v36 }
 0x16d   : > { %v638_v39 = vsel %vm637_vm14, %v893_v32, %v634_v37 }
 0x16e   : > { %v640_v40 = vmul.f32 %v639_v38, %v638_v39 }
 0x170   : > { %641 = vst [vmem:[%s1110_s7] sm:$0x1] %v640_v40  ;;  %v643_v42 = vmul.f32 %v640_v40, %v622_v26 }
 0x172   : > { %v644_v43 = vsub.f32 %v642_v41, %v643_v42 }
 0x174   : > { %645 = vst [vmem:[%s1124_s24] sm:$0x1] %v644_v43 }
 0x175 PF: > { %s1125_s29 = sld [smem:[#allocation6_spill]] }
 0x176   : > { %s1126_s27 = sld [smem:[#allocation4_spill]] }
 0x177   : > { %s1127_s28 = sld [smem:[#allocation5_spill]] }
 0x178   : > { %s1129_s30 = sld [smem:[#allocation8_spill]] }
 0x17b   : > { %s19_s9 = sadd.s32 1, %s1125_s29   ;;  %s1128_s29 = sld [smem:[#allocation7_spill]] }
 0x17c   : > { %p16_p2 = scmp.ge.s32.totalorder %s19_s9, 34  }
 0x17e   :  { %18 = sbr.rel (!%p16_p2) target bundleno = 4 (0x4), region = 104 }

// kernel: conv_bn_leaky.3
= control target key start
LH: loop header
LB: loop body
LE: loop exit
PB: predicated region body
PF: predicated region fallthrough
CT: control target
= control target key end

     0   :  { %s1145_s0 = inlined_call_operand.vmem [shape: bf16[512,128], index: 0, kind: input, shape index: {}]   ;;  %s1146_s1 = inlined_call_operand.vmem [shape: f32[1,128], index: 1, kind: input, shape index: {}]   ;;  %s1147_s2 = inlined_call_operand.vmem [shape: f32[1,128], index: 2, kind: input, shape index: {}]   ;;  %s1148_s3 = inlined_call_operand.vmem [shape: f32[512,128], index: 3, kind: output, shape index: {}]  }
   0x1   :  { %v539_v0 = vld [vmem:[%s1145_s0] sm:$0xff]   ;;  %v666_v5 = vld [vmem:[%s1145_s0 + $0x8] sm:$0xff]   ;;  %v667_v8 = vld [vmem:[%s1145_s0 + $0x10] sm:$0xff]  }
   0x2   :  { %v725_v1 = vld [vmem:[%s1146_s1] ss:$0 sm:$0xff]  ;;  %v540_v2 = vunpack.c.l.bf16 %v539_v0  ;;  %v541_v4 = vunpack.c.h.bf16 %v539_v0  ;;  %v544_v6 = vunpack.c.l.bf16 %v666_v5  ;;  %v545_v7 = vunpack.c.h.bf16 %v666_v5  ;;  %v668_v9 = vld [vmem:[%s1145_s0 + $0x18] sm:$0xff]   ;;  %v670_v39 = vld [vmem:[%s1145_s0 + $0x28] sm:$0xff]  }
   0x3   :  { %v730_v3 = vld [vmem:[%s1147_s2] ss:$0 sm:$0xff]  ;;  %v548_v12 = vunpack.c.l.bf16 %v667_v8  ;;  %v549_v13 = vunpack.c.h.bf16 %v667_v8  ;;  %v552_v16 = vunpack.c.l.bf16 %v668_v9  ;;  %v553_v17 = vunpack.c.h.bf16 %v668_v9  ;;  %v671_v42 = vld [vmem:[%s1145_s0 + $0x30] sm:$0xff]   ;;  %v672_v49 = vld [vmem:[%s1145_s0 + $0x38] sm:$0xff]  }
   0x4   :  { %v146_v10 = vmul.f32 %v725_v1, %v540_v2  ;;  %v147_v11 = vmul.f32 %v725_v1, %v541_v4  ;;  %v148_v14 = vmul.f32 %v725_v1, %v544_v6  ;;  %v149_v15 = vmul.f32 %v725_v1, %v545_v7  ;;  %v669_v26 = vld [vmem:[%s1145_s0 + $0x20] sm:$0xff]  }
   0x5   :  { %v150_v20 = vmul.f32 %v725_v1, %v548_v12  ;;  %v151_v21 = vmul.f32 %v725_v1, %v549_v13  ;;  %v152_v24 = vmul.f32 %v725_v1, %v552_v16  ;;  %v153_v25 = vmul.f32 %v725_v1, %v553_v17 }
   0x6   :  { %v214_v18 = vadd.f32 %v730_v3, %v146_v10  ;;  %v215_v19 = vadd.f32 %v730_v3, %v147_v11  ;;  %v216_v22 = vadd.f32 %v730_v3, %v148_v14  ;;  %v217_v23 = vadd.f32 %v730_v3, %v149_v15  ;;  %v673_v15 = vld [vmem:[%s1145_s0 + $0x40] sm:$0xff]  }
   0x7   :  { %v218_v33 = vadd.f32 %v730_v3, %v150_v20  ;;  %v219_v34 = vadd.f32 %v730_v3, %v151_v21  ;;  %v220_v37 = vadd.f32 %v730_v3, %v152_v24  ;;  %v221_v38 = vadd.f32 %v730_v3, %v153_v25 }
   0x8   :  { %vm278_vm0 = vcmp.gt.f32.partialorder %v214_v18, 0.0  ;;  %v342_v27 = vmul.f32 0.01, %v214_v18  ;;  %vm279_vm1 = vcmp.gt.f32.partialorder %v215_v19, 0.0  ;;  %v343_v28 = vmul.f32 0.01, %v215_v19 }
   0x9   :  { %vm280_vm2 = vcmp.gt.f32.partialorder %v216_v22, 0.0  ;;  %v344_v29 = vmul.f32 0.01, %v216_v22  ;;  %vm281_vm3 = vcmp.gt.f32.partialorder %v217_v23, 0.0  ;;  %v345_v30 = vmul.f32 0.01, %v217_v23 }
   0xa   :  { %v406_v31 = vsel %vm278_vm0, %v214_v18, %v342_v27  ;;  %v407_v32 = vsel %vm279_vm1, %v215_v19, %v343_v28  ;;  %vm282_vm4 = vcmp.gt.f32.partialorder %v218_v33, 0.0  ;;  %v346_v40 = vmul.f32 0.01, %v218_v33  ;;  %v674_v19 = vld [vmem:[%s1145_s0 + $0x48] sm:$0xff]   ;;  %v676_v28 = vld [vmem:[%s1145_s0 + $0x58] sm:$0xff]  }
   0xb   :  { %470 = vst [vmem:[%s1148_s3] sm:$0xff] %v406_v31  ;;  %v408_v35 = vsel %vm280_vm2, %v216_v22, %v344_v29  ;;  %v409_v36 = vsel %vm281_vm3, %v217_v23, %v345_v30  ;;  %vm283_vm5 = vcmp.gt.f32.partialorder %v219_v34, 0.0  ;;  %v556_v41 = vunpack.c.l.bf16 %v669_v26  ;;  %v675_v23 = vld [vmem:[%s1145_s0 + $0x50] sm:$0xff]  }
   0xc   :  { %471 = vst [vmem:[%s1148_s3 + $0x8] sm:$0xff] %v407_v32  ;;  %v347_v43 = vmul.f32 0.01, %v219_v34  ;;  %vm284_vm6 = vcmp.gt.f32.partialorder %v220_v37, 0.0  ;;  %v348_v44 = vmul.f32 0.01, %v220_v37  ;;  %v557_v45 = vunpack.c.h.bf16 %v669_v26 }
   0xd   :  { %472 = vst [vmem:[%s1148_s3 + $0x10] sm:$0xff] %v408_v35  ;;  %v410_v46 = vsel %vm282_vm4, %v218_v33, %v346_v40  ;;  %vm285_vm7 = vcmp.gt.f32.partialorder %v221_v38, 0.0  ;;  %v349_v47 = vmul.f32 0.01, %v221_v38  ;;  %v154_v48 = vmul.f32 %v725_v1, %v556_v41 }
   0xe   :  { %473 = vst [vmem:[%s1148_s3 + $0x18] sm:$0xff] %v409_v36  ;;  %v411_v50 = vsel %vm283_vm5, %v219_v34, %v347_v43  ;;  %v412_v51 = vsel %vm284_vm6, %v220_v37, %v348_v44  ;;  %v155_v52 = vmul.f32 %v725_v1, %v557_v45  ;;  %v560_v53 = vunpack.c.l.bf16 %v670_v39 }
   0xf   :  { %474 = vst [vmem:[%s1148_s3 + $0x20] sm:$0xff] %v410_v46  ;;  %v413_v54 = vsel %vm285_vm7, %v221_v38, %v349_v47  ;;  %v222_v55 = vadd.f32 %v730_v3, %v154_v48  ;;  %v561_v56 = vunpack.c.h.bf16 %v670_v39  ;;  %v564_v57 = vunpack.c.l.bf16 %v671_v42 }
  0x10   :  { %475 = vst [vmem:[%s1148_s3 + $0x28] sm:$0xff] %v411_v50  ;;  %v223_v58 = vadd.f32 %v730_v3, %v155_v52  ;;  %v156_v59 = vmul.f32 %v725_v1, %v560_v53  ;;  %v565_v60 = vunpack.c.h.bf16 %v671_v42  ;;  %v568_v61 = vunpack.c.l.bf16 %v672_v49  ;;  %v677_v52 = vld [vmem:[%s1145_s0 + $0x60] sm:$0xff]  }
  0x11   :  { %476 = vst [vmem:[%s1148_s3 + $0x30] sm:$0xff] %v412_v51  ;;  %vm286_vm8 = vcmp.gt.f32.partialorder %v222_v55, 0.0  ;;  %v350_v62 = vmul.f32 0.01, %v222_v55  ;;  %v157_v63 = vmul.f32 %v725_v1, %v561_v56  ;;  %v158_v0 = vmul.f32 %v725_v1, %v564_v57 }
  0x12   :  { %477 = vst [vmem:[%s1148_s3 + $0x38] sm:$0xff] %v413_v54  ;;  %vm287_vm9 = vcmp.gt.f32.partialorder %v223_v58, 0.0  ;;  %v351_v2 = vmul.f32 0.01, %v223_v58  ;;  %v224_v4 = vadd.f32 %v730_v3, %v156_v59  ;;  %v159_v5 = vmul.f32 %v725_v1, %v565_v60 }
  0x13   :  { %v414_v6 = vsel %vm286_vm8, %v222_v55, %v350_v62  ;;  %v225_v7 = vadd.f32 %v730_v3, %v157_v63  ;;  %v226_v8 = vadd.f32 %v730_v3, %v158_v0  ;;  %v160_v9 = vmul.f32 %v725_v1, %v568_v61  ;;  %v678_v61 = vld [vmem:[%s1145_s0 + $0x68] sm:$0xff]  }
  0x14   :  { %478 = vst [vmem:[%s1148_s3 + $0x40] sm:$0xff] %v414_v6  ;;  %v415_v10 = vsel %vm287_vm9, %v223_v58, %v351_v2  ;;  %vm288_vm10 = vcmp.gt.f32.partialorder %v224_v4, 0.0  ;;  %v352_v11 = vmul.f32 0.01, %v224_v4  ;;  %v227_v12 = vadd.f32 %v730_v3, %v159_v5 }
  0x15   :  { %479 = vst [vmem:[%s1148_s3 + $0x48] sm:$0xff] %v415_v10  ;;  %vm289_vm11 = vcmp.gt.f32.partialorder %v225_v7, 0.0  ;;  %v353_v13 = vmul.f32 0.01, %v225_v7  ;;  %vm290_vm12 = vcmp.gt.f32.partialorder %v226_v8, 0.0  ;;  %v228_v14 = vadd.f32 %v730_v3, %v160_v9  ;;  %v679_v10 = vld [vmem:[%s1145_s0 + $0x70] sm:$0xff]  }
  0x16   :  { %v416_v16 = vsel %vm288_vm10, %v224_v4, %v352_v11  ;;  %v354_v17 = vmul.f32 0.01, %v226_v8  ;;  %vm291_vm13 = vcmp.gt.f32.partialorder %v227_v12, 0.0  ;;  %v355_v18 = vmul.f32 0.01, %v227_v12 }
  0x17   :  { %480 = vst [vmem:[%s1148_s3 + $0x50] sm:$0xff] %v416_v16  ;;  %v417_v20 = vsel %vm289_vm11, %v225_v7, %v353_v13  ;;  %vm292_vm14 = vcmp.gt.f32.partialorder %v228_v14, 0.0  ;;  %v356_v21 = vmul.f32 0.01, %v228_v14  ;;  %v569_v22 = vunpack.c.h.bf16 %v672_v49 }
  0x18   :  { %481 = vst [vmem:[%s1148_s3 + $0x58] sm:$0xff] %v417_v20  ;;  %v418_v24 = vsel %vm290_vm12, %v226_v8, %v354_v17  ;;  %v419_v25 = vsel %vm291_vm13, %v227_v12, %v355_v18  ;;  %v572_v26 = vunpack.c.l.bf16 %v673_v15  ;;  %v573_v27 = vunpack.c.h.bf16 %v673_v15 }
  0x19   :  { %482 = vst [vmem:[%s1148_s3 + $0x60] sm:$0xff] %v418_v24  ;;  %v420_v29 = vsel %vm292_vm14, %v228_v14, %v356_v21  ;;  %v161_v30 = vmul.f32 %v725_v1, %v569_v22  ;;  %v576_v31 = vunpack.c.l.bf16 %v674_v19  ;;  %v577_v32 = vunpack.c.h.bf16 %v674_v19 }
  0x1a   :  { %483 = vst [vmem:[%s1148_s3 + $0x68] sm:$0xff] %v419_v25  ;;  %v162_v33 = vmul.f32 %v725_v1, %v572_v26  ;;  %v163_v34 = vmul.f32 %v725_v1, %v573_v27  ;;  %v580_v35 = vunpack.c.l.bf16 %v675_v23  ;;  %v581_v36 = vunpack.c.h.bf16 %v675_v23 }
  0x1b   :  { %484 = vst [vmem:[%s1148_s3 + $0x70] sm:$0xff] %v420_v29  ;;  %v229_v37 = vadd.f32 %v730_v3, %v161_v30  ;;  %v164_v38 = vmul.f32 %v725_v1, %v576_v31  ;;  %v165_v39 = vmul.f32 %v725_v1, %v577_v32  ;;  %v584_v40 = vunpack.c.l.bf16 %v676_v28  ;;  %v681_v29 = vld [vmem:[%s1145_s0 + $0x80] sm:$0xff]  }
  0x1c   :  { %v230_v41 = vadd.f32 %v730_v3, %v162_v33  ;;  %v231_v42 = vadd.f32 %v730_v3, %v163_v34  ;;  %v166_v43 = vmul.f32 %v725_v1, %v580_v35  ;;  %v167_v44 = vmul.f32 %v725_v1, %v581_v36 }
  0x1d   :  { %vm293_vm15 = vcmp.gt.f32.partialorder %v229_v37, 0.0  ;;  %v357_v45 = vmul.f32 0.01, %v229_v37  ;;  %v232_v46 = vadd.f32 %v730_v3, %v164_v38  ;;  %v233_v47 = vadd.f32 %v730_v3, %v165_v39 }
  0x1e   :  { %vm294_vm0 = vcmp.gt.f32.partialorder %v230_v41, 0.0  ;;  %v358_v48 = vmul.f32 0.01, %v230_v41  ;;  %vm295_vm1 = vcmp.gt.f32.partialorder %v231_v42, 0.0  ;;  %v359_v49 = vmul.f32 0.01, %v231_v42 }
  0x1f   :  { %v421_v50 = vsel %vm293_vm15, %v229_v37, %v357_v45  ;;  %vm296_vm2 = vcmp.gt.f32.partialorder %v232_v46, 0.0  ;;  %v360_v51 = vmul.f32 0.01, %v232_v46  ;;  %vm297_vm3 = vcmp.gt.f32.partialorder %v233_v47, 0.0 }
  0x20   :  { %485 = vst [vmem:[%s1148_s3 + $0x78] sm:$0xff] %v421_v50  ;;  %v422_v53 = vsel %vm294_vm0, %v230_v41, %v358_v48  ;;  %v423_v54 = vsel %vm295_vm1, %v231_v42, %v359_v49  ;;  %v361_v55 = vmul.f32 0.01, %v233_v47  ;;  %v234_v56 = vadd.f32 %v730_v3, %v166_v43 }
  0x21   :  { %486 = vst [vmem:[%s1148_s3 + $0x80] sm:$0xff] %v422_v53  ;;  %v424_v57 = vsel %vm296_vm2, %v232_v46, %v360_v51  ;;  %v235_v58 = vadd.f32 %v730_v3, %v167_v44  ;;  %v168_v59 = vmul.f32 %v725_v1, %v584_v40  ;;  %v585_v60 = vunpack.c.h.bf16 %v676_v28  ;;  %v680_v28 = vld [vmem:[%s1145_s0 + $0x78] sm:$0xff]   ;;  %v682_v40 = vld [vmem:[%s1145_s0 + $0x88] sm:$0xff]  }
  0x22   :  { %487 = vst [vmem:[%s1148_s3 + $0x88] sm:$0xff] %v423_v54  ;;  %v425_v62 = vsel %vm297_vm3, %v233_v47, %v361_v55  ;;  %vm298_vm4 = vcmp.gt.f32.partialorder %v234_v56, 0.0  ;;  %v362_v63 = vmul.f32 0.01, %v234_v56  ;;  %v588_v0 = vunpack.c.l.bf16 %v677_v52 }
  0x23   :  { %488 = vst [vmem:[%s1148_s3 + $0x90] sm:$0xff] %v424_v57  ;;  %vm299_vm5 = vcmp.gt.f32.partialorder %v235_v58, 0.0  ;;  %v363_v2 = vmul.f32 0.01, %v235_v58  ;;  %v236_v4 = vadd.f32 %v730_v3, %v168_v59  ;;  %v169_v5 = vmul.f32 %v725_v1, %v585_v60 }
  0x24   :  { %489 = vst [vmem:[%s1148_s3 + $0x98] sm:$0xff] %v425_v62  ;;  %v426_v6 = vsel %vm298_vm4, %v234_v56, %v362_v63  ;;  %v170_v7 = vmul.f32 %v725_v1, %v588_v0  ;;  %v589_v8 = vunpack.c.h.bf16 %v677_v52  ;;  %v592_v9 = vunpack.c.l.bf16 %v678_v61 }
  0x25   :  { %490 = vst [vmem:[%s1148_s3 + $0xa0] sm:$0xff] %v426_v6  ;;  %v427_v11 = vsel %vm299_vm5, %v235_v58, %v363_v2  ;;  %vm300_vm6 = vcmp.gt.f32.partialorder %v236_v4, 0.0  ;;  %v364_v12 = vmul.f32 0.01, %v236_v4  ;;  %v237_v13 = vadd.f32 %v730_v3, %v169_v5  ;;  %v684_v6 = vld [vmem:[%s1145_s0 + $0x98] sm:$0xff]  }
  0x26   :  { %491 = vst [vmem:[%s1148_s3 + $0xa8] sm:$0xff] %v427_v11  ;;  %v238_v14 = vadd.f32 %v730_v3, %v170_v7  ;;  %v171_v15 = vmul.f32 %v725_v1, %v589_v8  ;;  %v172_v16 = vmul.f32 %v725_v1, %v592_v9  ;;  %v593_v17 = vunpack.c.h.bf16 %v678_v61  ;;  %v683_v61 = vld [vmem:[%s1145_s0 + $0x90] sm:$0xff]  }
  0x27   :  { %v428_v18 = vsel %vm300_vm6, %v236_v4, %v364_v12  ;;  %vm301_vm7 = vcmp.gt.f32.partialorder %v237_v13, 0.0  ;;  %v365_v19 = vmul.f32 0.01, %v237_v13  ;;  %v596_v20 = vunpack.c.l.bf16 %v679_v10 }
  0x28   :  { %492 = vst [vmem:[%s1148_s3 + $0xb0] sm:$0xff] %v428_v18  ;;  %vm302_vm8 = vcmp.gt.f32.partialorder %v238_v14, 0.0  ;;  %v366_v21 = vmul.f32 0.01, %v238_v14  ;;  %v239_v22 = vadd.f32 %v730_v3, %v171_v15  ;;  %v240_v23 = vadd.f32 %v730_v3, %v172_v16  ;;  %v686_v18 = vld [vmem:[%s1145_s0 + $0xa8] sm:$0xff]  }
  0x29   :  { %v429_v24 = vsel %vm301_vm7, %v237_v13, %v365_v19  ;;  %v173_v25 = vmul.f32 %v725_v1, %v593_v17  ;;  %v174_v26 = vmul.f32 %v725_v1, %v596_v20  ;;  %v597_v27 = vunpack.c.h.bf16 %v679_v10  ;;  %v685_v13 = vld [vmem:[%s1145_s0 + $0xa0] sm:$0xff]  }
  0x2a   :  { %493 = vst [vmem:[%s1148_s3 + $0xb8] sm:$0xff] %v429_v24  ;;  %v430_v30 = vsel %vm302_vm8, %v238_v14, %v366_v21  ;;  %vm303_vm9 = vcmp.gt.f32.partialorder %v239_v22, 0.0  ;;  %v367_v31 = vmul.f32 0.01, %v239_v22  ;;  %vm304_vm10 = vcmp.gt.f32.partialorder %v240_v23, 0.0 }
  0x2b   :  { %494 = vst [vmem:[%s1148_s3 + $0xc0] sm:$0xff] %v430_v30  ;;  %v368_v32 = vmul.f32 0.01, %v240_v23  ;;  %v241_v33 = vadd.f32 %v730_v3, %v173_v25  ;;  %v242_v34 = vadd.f32 %v730_v3, %v174_v26  ;;  %v175_v35 = vmul.f32 %v725_v1, %v597_v27 }
  0x2c   :  { %v431_v36 = vsel %vm303_vm9, %v239_v22, %v367_v31  ;;  %v600_v37 = vunpack.c.l.bf16 %v680_v28  ;;  %v601_v38 = vunpack.c.h.bf16 %v680_v28  ;;  %v604_v39 = vunpack.c.l.bf16 %v681_v29 }
  0x2d   :  { %495 = vst [vmem:[%s1148_s3 + $0xc8] sm:$0xff] %v431_v36  ;;  %v432_v41 = vsel %vm304_vm10, %v240_v23, %v368_v32  ;;  %vm305_vm11 = vcmp.gt.f32.partialorder %v241_v33, 0.0  ;;  %v369_v42 = vmul.f32 0.01, %v241_v33  ;;  %vm306_vm12 = vcmp.gt.f32.partialorder %v242_v34, 0.0 }
  0x2e   :  { %496 = vst [vmem:[%s1148_s3 + $0xd0] sm:$0xff] %v432_v41  ;;  %v370_v43 = vmul.f32 0.01, %v242_v34  ;;  %v243_v44 = vadd.f32 %v730_v3, %v175_v35  ;;  %v176_v45 = vmul.f32 %v725_v1, %v600_v37  ;;  %v177_v46 = vmul.f32 %v725_v1, %v601_v38 }
  0x2f   :  { %v433_v47 = vsel %vm305_vm11, %v241_v33, %v369_v42  ;;  %v178_v48 = vmul.f32 %v725_v1, %v604_v39  ;;  %v605_v49 = vunpack.c.h.bf16 %v681_v29  ;;  %v608_v50 = vunpack.c.l.bf16 %v682_v40 }
  0x30   :  { %497 = vst [vmem:[%s1148_s3 + $0xd8] sm:$0xff] %v433_v47  ;;  %v434_v51 = vsel %vm306_vm12, %v242_v34, %v370_v43  ;;  %vm307_vm13 = vcmp.gt.f32.partialorder %v243_v44, 0.0  ;;  %v371_v52 = vmul.f32 0.01, %v243_v44  ;;  %v244_v53 = vadd.f32 %v730_v3, %v176_v45 }
  0x31   :  { %498 = vst [vmem:[%s1148_s3 + $0xe0] sm:$0xff] %v434_v51  ;;  %v245_v54 = vadd.f32 %v730_v3, %v177_v46  ;;  %v246_v55 = vadd.f32 %v730_v3, %v178_v48  ;;  %v179_v56 = vmul.f32 %v725_v1, %v605_v49  ;;  %v180_v57 = vmul.f32 %v725_v1, %v608_v50  ;;  %v687_v46 = vld [vmem:[%s1145_s0 + $0xb0] sm:$0xff]   ;;  %v688_v50 = vld [vmem:[%s1145_s0 + $0xb8] sm:$0xff]  }
  0x32   :  { %v435_v58 = vsel %vm307_vm13, %v243_v44, %v371_v52  ;;  %vm308_vm14 = vcmp.gt.f32.partialorder %v244_v53, 0.0  ;;  %v372_v59 = vmul.f32 0.01, %v244_v53  ;;  %v609_v60 = vunpack.c.h.bf16 %v682_v40 }
  0x33   :  { %499 = vst [vmem:[%s1148_s3 + $0xe8] sm:$0xff] %v435_v58  ;;  %vm309_vm15 = vcmp.gt.f32.partialorder %v245_v54, 0.0  ;;  %v373_v62 = vmul.f32 0.01, %v245_v54  ;;  %vm310_vm0 = vcmp.gt.f32.partialorder %v246_v55, 0.0  ;;  %v247_v63 = vadd.f32 %v730_v3, %v179_v56 }
  0x34   :  { %v436_v0 = vsel %vm308_vm14, %v244_v53, %v372_v59  ;;  %v374_v2 = vmul.f32 0.01, %v246_v55  ;;  %v248_v4 = vadd.f32 %v730_v3, %v180_v57  ;;  %v181_v5 = vmul.f32 %v725_v1, %v609_v60  ;;  %v689_v53 = vld [vmem:[%s1145_s0 + $0xc0] sm:$0xff]  }
  0x35   :  { %500 = vst [vmem:[%s1148_s3 + $0xf0] sm:$0xff] %v436_v0  ;;  %v437_v7 = vsel %vm309_vm15, %v245_v54, %v373_v62  ;;  %vm311_vm1 = vcmp.gt.f32.partialorder %v247_v63, 0.0  ;;  %v375_v8 = vmul.f32 0.01, %v247_v63  ;;  %v612_v9 = vunpack.c.l.bf16 %v683_v61 }
  0x36   :  { %501 = vst [vmem:[%s1148_s3 + $0xf8] sm:$0xff] %v437_v7  ;;  %v438_v10 = vsel %vm310_vm0, %v246_v55, %v374_v2  ;;  %vm312_vm2 = vcmp.gt.f32.partialorder %v248_v4, 0.0  ;;  %v376_v11 = vmul.f32 0.01, %v248_v4  ;;  %v249_v12 = vadd.f32 %v730_v3, %v181_v5 }
  0x37   :  { %502 = vst [vmem:[%s1148_s3 + $0x100] sm:$0xff] %v438_v10  ;;  %v439_v14 = vsel %vm311_vm1, %v247_v63, %v375_v8  ;;  %v182_v15 = vmul.f32 %v725_v1, %v612_v9  ;;  %v613_v16 = vunpack.c.h.bf16 %v683_v61  ;;  %v616_v17 = vunpack.c.l.bf16 %v684_v6 }
  0x38   :  { %503 = vst [vmem:[%s1148_s3 + $0x108] sm:$0xff] %v439_v14  ;;  %v440_v19 = vsel %vm312_vm2, %v248_v4, %v376_v11  ;;  %vm313_vm3 = vcmp.gt.f32.partialorder %v249_v12, 0.0  ;;  %v377_v20 = vmul.f32 0.01, %v249_v12  ;;  %v617_v21 = vunpack.c.h.bf16 %v684_v6  ;;  %v690_v4 = vld [vmem:[%s1145_s0 + $0xc8] sm:$0xff]  }
  0x39   :  { %504 = vst [vmem:[%s1148_s3 + $0x110] sm:$0xff] %v440_v19  ;;  %v250_v22 = vadd.f32 %v730_v3, %v182_v15  ;;  %v183_v23 = vmul.f32 %v725_v1, %v613_v16  ;;  %v184_v24 = vmul.f32 %v725_v1, %v616_v17  ;;  %v620_v25 = vunpack.c.l.bf16 %v685_v13 }
  0x3a   :  { %v441_v26 = vsel %vm313_vm3, %v249_v12, %v377_v20  ;;  %v185_v27 = vmul.f32 %v725_v1, %v617_v21  ;;  %v621_v28 = vunpack.c.h.bf16 %v685_v13  ;;  %v624_v29 = vunpack.c.l.bf16 %v686_v18 }
  0x3b   :  { %505 = vst [vmem:[%s1148_s3 + $0x118] sm:$0xff] %v441_v26  ;;  %vm314_vm4 = vcmp.gt.f32.partialorder %v250_v22, 0.0  ;;  %v378_v30 = vmul.f32 0.01, %v250_v22  ;;  %v251_v31 = vadd.f32 %v730_v3, %v183_v23  ;;  %v252_v32 = vadd.f32 %v730_v3, %v184_v24  ;;  %v692_v24 = vld [vmem:[%s1145_s0 + $0xd8] sm:$0xff]  }
  0x3c   :  { %v253_v33 = vadd.f32 %v730_v3, %v185_v27  ;;  %v186_v34 = vmul.f32 %v725_v1, %v620_v25  ;;  %v187_v35 = vmul.f32 %v725_v1, %v621_v28  ;;  %v188_v36 = vmul.f32 %v725_v1, %v624_v29  ;;  %v693_v29 = vld [vmem:[%s1145_s0 + $0xe0] sm:$0xff]  }
  0x3d   :  { %v442_v37 = vsel %vm314_vm4, %v250_v22, %v378_v30  ;;  %vm315_vm5 = vcmp.gt.f32.partialorder %v251_v31, 0.0  ;;  %v379_v38 = vmul.f32 0.01, %v251_v31  ;;  %vm316_vm6 = vcmp.gt.f32.partialorder %v252_v32, 0.0 }
  0x3e   :  { %506 = vst [vmem:[%s1148_s3 + $0x120] sm:$0xff] %v442_v37  ;;  %v380_v39 = vmul.f32 0.01, %v252_v32  ;;  %vm317_vm7 = vcmp.gt.f32.partialorder %v253_v33, 0.0  ;;  %v381_v40 = vmul.f32 0.01, %v253_v33  ;;  %v254_v41 = vadd.f32 %v730_v3, %v186_v34 }
  0x3f   :  { %v443_v42 = vsel %vm315_vm5, %v251_v31, %v379_v38  ;;  %v255_v43 = vadd.f32 %v730_v3, %v187_v35  ;;  %v256_v44 = vadd.f32 %v730_v3, %v188_v36  ;;  %v625_v45 = vunpack.c.h.bf16 %v686_v18  ;;  %v691_v18 = vld [vmem:[%s1145_s0 + $0xd0] sm:$0xff]  }
  0x40   :  { %507 = vst [vmem:[%s1148_s3 + $0x128] sm:$0xff] %v443_v42  ;;  %v444_v47 = vsel %vm316_vm6, %v252_v32, %v380_v39  ;;  %v445_v48 = vsel %vm317_vm7, %v253_v33, %v381_v40  ;;  %vm318_vm8 = vcmp.gt.f32.partialorder %v254_v41, 0.0  ;;  %v382_v49 = vmul.f32 0.01, %v254_v41 }
  0x41   :  { %508 = vst [vmem:[%s1148_s3 + $0x130] sm:$0xff] %v444_v47  ;;  %vm319_vm9 = vcmp.gt.f32.partialorder %v255_v43, 0.0  ;;  %v383_v51 = vmul.f32 0.01, %v255_v43  ;;  %vm320_vm10 = vcmp.gt.f32.partialorder %v256_v44, 0.0  ;;  %v189_v52 = vmul.f32 %v725_v1, %v625_v45 }
  0x42   :  { %509 = vst [vmem:[%s1148_s3 + $0x138] sm:$0xff] %v445_v48  ;;  %v446_v54 = vsel %vm318_vm8, %v254_v41, %v382_v49  ;;  %v384_v55 = vmul.f32 0.01, %v256_v44  ;;  %v628_v56 = vunpack.c.l.bf16 %v687_v46  ;;  %v629_v57 = vunpack.c.h.bf16 %v687_v46 }
  0x43   :  { %510 = vst [vmem:[%s1148_s3 + $0x140] sm:$0xff] %v446_v54  ;;  %v447_v58 = vsel %vm319_vm9, %v255_v43, %v383_v51  ;;  %v257_v59 = vadd.f32 %v730_v3, %v189_v52  ;;  %v632_v60 = vunpack.c.l.bf16 %v688_v50  ;;  %v633_v61 = vunpack.c.h.bf16 %v688_v50 }
  0x44   :  { %511 = vst [vmem:[%s1148_s3 + $0x148] sm:$0xff] %v447_v58  ;;  %v448_v62 = vsel %vm320_vm10, %v256_v44, %v384_v55  ;;  %v190_v63 = vmul.f32 %v725_v1, %v628_v56  ;;  %v191_v0 = vmul.f32 %v725_v1, %v629_v57  ;;  %v636_v2 = vunpack.c.l.bf16 %v689_v53 }
  0x45   :  { %512 = vst [vmem:[%s1148_s3 + $0x150] sm:$0xff] %v448_v62  ;;  %vm321_vm11 = vcmp.gt.f32.partialorder %v257_v59, 0.0  ;;  %v385_v5 = vmul.f32 0.01, %v257_v59  ;;  %v192_v6 = vmul.f32 %v725_v1, %v632_v60  ;;  %v193_v7 = vmul.f32 %v725_v1, %v633_v61  ;;  %v694_v61 = vld [vmem:[%s1145_s0 + $0xe8] sm:$0xff]  }
  0x46   :  { %v258_v8 = vadd.f32 %v730_v3, %v190_v63  ;;  %v259_v9 = vadd.f32 %v730_v3, %v191_v0  ;;  %v194_v10 = vmul.f32 %v725_v1, %v636_v2  ;;  %v637_v11 = vunpack.c.h.bf16 %v689_v53  ;;  %v695_v2 = vld [vmem:[%s1145_s0 + $0xf0] sm:$0xff]  }
  0x47   :  { %v449_v12 = vsel %vm321_vm11, %v257_v59, %v385_v5  ;;  %v260_v13 = vadd.f32 %v730_v3, %v192_v6  ;;  %v261_v14 = vadd.f32 %v730_v3, %v193_v7  ;;  %v640_v15 = vunpack.c.l.bf16 %v690_v4  ;;  %v696_v6 = vld [vmem:[%s1145_s0 + $0xf8] sm:$0xff]  }
  0x48   :  { %513 = vst [vmem:[%s1148_s3 + $0x158] sm:$0xff] %v449_v12  ;;  %vm322_vm12 = vcmp.gt.f32.partialorder %v258_v8, 0.0  ;;  %v386_v16 = vmul.f32 0.01, %v258_v8  ;;  %vm323_vm13 = vcmp.gt.f32.partialorder %v259_v9, 0.0  ;;  %v262_v17 = vadd.f32 %v730_v3, %v194_v10 }
  0x49   :  { %v387_v19 = vmul.f32 0.01, %v259_v9  ;;  %vm324_vm14 = vcmp.gt.f32.partialorder %v260_v13, 0.0  ;;  %v388_v20 = vmul.f32 0.01, %v260_v13  ;;  %vm325_vm15 = vcmp.gt.f32.partialorder %v261_v14, 0.0 }
  0x4a   :  { %v450_v21 = vsel %vm322_vm12, %v258_v8, %v386_v16  ;;  %v389_v22 = vmul.f32 0.01, %v261_v14  ;;  %vm326_vm0 = vcmp.gt.f32.partialorder %v262_v17, 0.0  ;;  %v390_v23 = vmul.f32 0.01, %v262_v17 }
  0x4b   :  { %514 = vst [vmem:[%s1148_s3 + $0x160] sm:$0xff] %v450_v21  ;;  %v451_v25 = vsel %vm323_vm13, %v259_v9, %v387_v19  ;;  %v452_v26 = vsel %vm324_vm14, %v260_v13, %v388_v20  ;;  %v195_v27 = vmul.f32 %v725_v1, %v637_v11  ;;  %v196_v28 = vmul.f32 %v725_v1, %v640_v15 }
  0x4c   :  { %515 = vst [vmem:[%s1148_s3 + $0x168] sm:$0xff] %v451_v25  ;;  %v453_v30 = vsel %vm325_vm15, %v261_v14, %v389_v22  ;;  %v454_v31 = vsel %vm326_vm0, %v262_v17, %v390_v23  ;;  %v641_v32 = vunpack.c.h.bf16 %v690_v4  ;;  %v644_v33 = vunpack.c.l.bf16 %v691_v18 }
  0x4d   :  { %516 = vst [vmem:[%s1148_s3 + $0x170] sm:$0xff] %v452_v26  ;;  %v263_v34 = vadd.f32 %v730_v3, %v195_v27  ;;  %v264_v35 = vadd.f32 %v730_v3, %v196_v28  ;;  %v645_v36 = vunpack.c.h.bf16 %v691_v18  ;;  %v648_v37 = vunpack.c.l.bf16 %v692_v24 }
  0x4e   :  { %517 = vst [vmem:[%s1148_s3 + $0x178] sm:$0xff] %v453_v30  ;;  %v197_v38 = vmul.f32 %v725_v1, %v641_v32  ;;  %v198_v39 = vmul.f32 %v725_v1, %v644_v33  ;;  %v649_v40 = vunpack.c.h.bf16 %v692_v24  ;;  %v652_v41 = vunpack.c.l.bf16 %v693_v29 }
  0x4f   :  { %518 = vst [vmem:[%s1148_s3 + $0x180] sm:$0xff] %v454_v31  ;;  %vm327_vm1 = vcmp.gt.f32.partialorder %v263_v34, 0.0  ;;  %v391_v42 = vmul.f32 0.01, %v263_v34  ;;  %vm328_vm2 = vcmp.gt.f32.partialorder %v264_v35, 0.0  ;;  %v199_v43 = vmul.f32 %v725_v1, %v645_v36 }
  0x50   :  { %v392_v44 = vmul.f32 0.01, %v264_v35  ;;  %v265_v45 = vadd.f32 %v730_v3, %v197_v38  ;;  %v266_v46 = vadd.f32 %v730_v3, %v198_v39  ;;  %v200_v47 = vmul.f32 %v725_v1, %v648_v37 }
  0x51   :  { %v455_v48 = vsel %vm327_vm1, %v263_v34, %v391_v42  ;;  %v267_v49 = vadd.f32 %v730_v3, %v199_v43  ;;  %v201_v50 = vmul.f32 %v725_v1, %v649_v40  ;;  %v202_v51 = vmul.f32 %v725_v1, %v652_v41 }
  0x52   :  { %519 = vst [vmem:[%s1148_s3 + $0x188] sm:$0xff] %v455_v48  ;;  %v456_v52 = vsel %vm328_vm2, %v264_v35, %v392_v44  ;;  %vm329_vm3 = vcmp.gt.f32.partialorder %v265_v45, 0.0  ;;  %v393_v53 = vmul.f32 0.01, %v265_v45  ;;  %vm330_vm4 = vcmp.gt.f32.partialorder %v266_v46, 0.0 }
  0x53   :  { %520 = vst [vmem:[%s1148_s3 + $0x190] sm:$0xff] %v456_v52  ;;  %v394_v54 = vmul.f32 0.01, %v266_v46  ;;  %vm331_vm5 = vcmp.gt.f32.partialorder %v267_v49, 0.0  ;;  %v395_v55 = vmul.f32 0.01, %v267_v49  ;;  %v268_v56 = vadd.f32 %v730_v3, %v200_v47 }
  0x54   :  { %v457_v57 = vsel %vm329_vm3, %v265_v45, %v393_v53  ;;  %v269_v58 = vadd.f32 %v730_v3, %v201_v50  ;;  %v270_v59 = vadd.f32 %v730_v3, %v202_v51  ;;  %v653_v60 = vunpack.c.h.bf16 %v693_v29 }
  0x55   :  { %521 = vst [vmem:[%s1148_s3 + $0x198] sm:$0xff] %v457_v57  ;;  %v458_v62 = vsel %vm330_vm4, %v266_v46, %v394_v54  ;;  %v459_v63 = vsel %vm331_vm5, %v267_v49, %v395_v55  ;;  %vm332_vm6 = vcmp.gt.f32.partialorder %v268_v56, 0.0  ;;  %v396_v0 = vmul.f32 0.01, %v268_v56 }
  0x56   :  { %522 = vst [vmem:[%s1148_s3 + $0x1a0] sm:$0xff] %v458_v62  ;;  %vm333_vm7 = vcmp.gt.f32.partialorder %v269_v58, 0.0  ;;  %v397_v4 = vmul.f32 0.01, %v269_v58  ;;  %vm334_vm8 = vcmp.gt.f32.partialorder %v270_v59, 0.0  ;;  %v203_v5 = vmul.f32 %v725_v1, %v653_v60 }
  0x57   :  { %523 = vst [vmem:[%s1148_s3 + $0x1a8] sm:$0xff] %v459_v63  ;;  %v460_v7 = vsel %vm332_vm6, %v268_v56, %v396_v0  ;;  %v398_v8 = vmul.f32 0.01, %v270_v59  ;;  %v656_v9 = vunpack.c.l.bf16 %v694_v61  ;;  %v657_v10 = vunpack.c.h.bf16 %v694_v61 }
  0x58   :  { %524 = vst [vmem:[%s1148_s3 + $0x1b0] sm:$0xff] %v460_v7  ;;  %v461_v11 = vsel %vm333_vm7, %v269_v58, %v397_v4  ;;  %v271_v12 = vadd.f32 %v730_v3, %v203_v5  ;;  %v660_v13 = vunpack.c.l.bf16 %v695_v2  ;;  %v661_v14 = vunpack.c.h.bf16 %v695_v2 }
  0x59   :  { %525 = vst [vmem:[%s1148_s3 + $0x1b8] sm:$0xff] %v461_v11  ;;  %v462_v15 = vsel %vm334_vm8, %v270_v59, %v398_v8  ;;  %v204_v16 = vmul.f32 %v725_v1, %v656_v9  ;;  %v205_v17 = vmul.f32 %v725_v1, %v657_v10  ;;  %v664_v18 = vunpack.c.l.bf16 %v696_v6 }
  0x5a   :  { %526 = vst [vmem:[%s1148_s3 + $0x1c0] sm:$0xff] %v462_v15  ;;  %vm335_vm9 = vcmp.gt.f32.partialorder %v271_v12, 0.0  ;;  %v399_v19 = vmul.f32 0.01, %v271_v12  ;;  %v206_v20 = vmul.f32 %v725_v1, %v660_v13  ;;  %v207_v21 = vmul.f32 %v725_v1, %v661_v14 }
  0x5b   :  { %v272_v22 = vadd.f32 %v730_v3, %v204_v16  ;;  %v273_v23 = vadd.f32 %v730_v3, %v205_v17  ;;  %v208_v24 = vmul.f32 %v725_v1, %v664_v18  ;;  %v665_v28 = vunpack.c.h.bf16 %v696_v6 }
  0x5c   :  { %v463_v25 = vsel %vm335_vm9, %v271_v12, %v399_v19  ;;  %v274_v26 = vadd.f32 %v730_v3, %v206_v20  ;;  %v275_v27 = vadd.f32 %v730_v3, %v207_v21 }
  0x5d   :  { %527 = vst [vmem:[%s1148_s3 + $0x1c8] sm:$0xff] %v463_v25  ;;  %vm336_vm10 = vcmp.gt.f32.partialorder %v272_v22, 0.0  ;;  %v400_v29 = vmul.f32 0.01, %v272_v22  ;;  %vm337_vm11 = vcmp.gt.f32.partialorder %v273_v23, 0.0  ;;  %v276_v30 = vadd.f32 %v730_v3, %v208_v24 }
  0x5e   :  { %v401_v31 = vmul.f32 0.01, %v273_v23  ;;  %vm338_vm12 = vcmp.gt.f32.partialorder %v274_v26, 0.0  ;;  %v402_v32 = vmul.f32 0.01, %v274_v26  ;;  %vm339_vm13 = vcmp.gt.f32.partialorder %v275_v27, 0.0 }
  0x5f   :  { %v464_v33 = vsel %vm336_vm10, %v272_v22, %v400_v29  ;;  %v403_v34 = vmul.f32 0.01, %v275_v27  ;;  %vm340_vm14 = vcmp.gt.f32.partialorder %v276_v30, 0.0  ;;  %v404_v35 = vmul.f32 0.01, %v276_v30 }
  0x60   :  { %528 = vst [vmem:[%s1148_s3 + $0x1d0] sm:$0xff] %v464_v33  ;;  %v465_v36 = vsel %vm337_vm11, %v273_v23, %v401_v31  ;;  %v466_v37 = vsel %vm338_vm12, %v274_v26, %v402_v32  ;;  %v209_v38 = vmul.f32 %v725_v1, %v665_v28 }
  0x61   :  { %529 = vst [vmem:[%s1148_s3 + $0x1d8] sm:$0xff] %v465_v36  ;;  %v467_v39 = vsel %vm339_vm13, %v275_v27, %v403_v34  ;;  %v468_v40 = vsel %vm340_vm14, %v276_v30, %v404_v35 }
  0x62   :  { %530 = vst [vmem:[%s1148_s3 + $0x1e0] sm:$0xff] %v466_v37  ;;  %v277_v41 = vadd.f32 %v730_v3, %v209_v38 }
  0x63   :  { %531 = vst [vmem:[%s1148_s3 + $0x1e8] sm:$0xff] %v467_v39 }
  0x64   :  { %532 = vst [vmem:[%s1148_s3 + $0x1f0] sm:$0xff] %v468_v40  ;;  %vm341_vm15 = vcmp.gt.f32.partialorder %v277_v41, 0.0  ;;  %v405_v1 = vmul.f32 0.01, %v277_v41 }
  0x66   :  { %v469_v42 = vsel %vm341_vm15, %v277_v41, %v405_v1 }
  0x67   :  { %533 = vst [vmem:[%s1148_s3 + $0x1f8] sm:$0xff] %v469_v42 }

</bundles_post_ra>
